<compile_context>
chip_gen: v5e
topology: v5e:2x2
jax: 0.10.0
libtpu: 0.0.40
codegen_flags: <defaults>
</compile_context>

<pallas_src>
import math

import jax
import jax.numpy as jnp
from jax.experimental import pallas as pl
from jax.experimental.pallas import tpu as pltpu


# ----------------------------------------------------------------------------
# Kernel
# ----------------------------------------------------------------------------
def _make_kernel(c_real, hw_real, c_pad, hw_pad):
    """Build the FAMv2 kernel for a block of B samples with full (C, HW) extents.

    Padding invariants handled here:
      * x is zero-padded along C (to c_pad) and HW (to hw_pad) in the wrapper.
      * max reductions mask padded lanes / sublanes to -inf.
      * means divide by the real extents (padded entries are zero, so sums are
        already correct).
    """
    inv_hw = 1.0 / float(hw_real)
    inv_c = 1.0 / float(c_real)
    mask_hw = hw_pad != hw_real
    mask_c = c_pad != c_real

    def kernel(x_ref,
               w1c_ref, b1c_ref, w2c_ref, b2c_ref,
               w1s_ref, b1s_ref, w2s_ref, b2s_ref,
               o_ref):
        x = x_ref[...].astype(jnp.float32)                     # (B, Cp, HWp)

        # ---- pooled descriptors (max + mean) ----
        x_cmax = x
        if mask_hw:   # mask padded lanes for the max-over-spatial
            lane = jax.lax.broadcasted_iota(jnp.int32, x.shape, 2)
            x_cmax = jnp.where(lane < hw_real, x, -jnp.inf)
        x_smax = x
        if mask_c:    # mask padded channels for the max-over-channel
            ch = jax.lax.broadcasted_iota(jnp.int32, x.shape, 1)
            x_smax = jnp.where(ch < c_real, x, -jnp.inf)

        xc = jnp.max(x_cmax, axis=2) + jnp.sum(x, axis=2) * inv_hw   # (B, Cp)
        xs = jnp.max(x_smax, axis=1) + jnp.sum(x, axis=1) * inv_c    # (B, HWp)

        # ---- channel MLP: Linear(BN folded) -> ReLU -> Linear(+bias) ----
        hc = jnp.dot(xc, w1c_ref[...], preferred_element_type=jnp.float32)
        hc = jnp.maximum(hc + b1c_ref[...], 0.0)
        ec = jnp.dot(hc, w2c_ref[...], preferred_element_type=jnp.float32) + b2c_ref[...]

        # ---- spatial MLP ----
        hs = jnp.dot(xs, w1s_ref[...], preferred_element_type=jnp.float32)
        hs = jnp.maximum(hs + b1s_ref[...], 0.0)
        es = jnp.dot(hs, w2s_ref[...], preferred_element_type=jnp.float32) + b2s_ref[...]

        # ---- gating + broadcast multiply ----
        attn_c = jax.nn.sigmoid(ec)                            # (B, Cp)
        attn_s = jax.nn.sigmoid(es)                            # (B, HWp)
        o_ref[...] = (x * attn_c[:, :, None] * attn_s[:, None, :]).astype(o_ref.dtype)

    return kernel


# ----------------------------------------------------------------------------
# Sizing helpers
# ----------------------------------------------------------------------------
_DEFAULT_VMEM = 64 * 1024 * 1024   # conservative fallback = v7x per-TC capacity


def _round_up(v, m):
    return ((v + m - 1) // m) * m


def _tpu_vmem_and_cores():
    """(per-core VMEM bytes, #TensorCores per chip) with safe fallbacks."""
    vmem = _DEFAULT_VMEM
    cores = None
    try:
        info = pltpu.get_tpu_info()
        vmem = int(getattr(info, "vmem_capacity_bytes", _DEFAULT_VMEM))
        for name in ("num_cores", "core_count", "num_tensorcores"):
            v = getattr(info, name, None)
            if isinstance(v, int) and v > 0:
                cores = v
                break
    except Exception:
        pass
    if cores is None:
        # Heuristic: <=96 MiB per-core VMEM => v7x-class (2 TCs/chip), else 1 TC.
        cores = 2 if vmem <= 96 * 1024 * 1024 else 1
    return vmem, cores


def _choose_block_batch(n, c_pad, hw_pad, itemsize, block_budget_bytes, min_grid_steps):
    """Samples per grid step.

    Live block VMEM ~= 2 pipeline buffers x (input + output) x B*C*HW*itemsize.
    Cap B by the budget; on multi-core parts also keep >= min_grid_steps grid
    steps so each TensorCore gets enough steps to hide DMA.
    """
    per_sample = 4 * c_pad * hw_pad * itemsize
    b = max(1, int(block_budget_bytes) // per_sample)
    if min_grid_steps > 1 and n >= min_grid_steps:
        b = min(b, max(1, n // min_grid_steps))
    return max(1, min(b, n))


# ----------------------------------------------------------------------------
# Wrapper
# ----------------------------------------------------------------------------
def famv2_forward(x_nchw, params, *, max_batch_per_step=None, vmem_limit_bytes=None):
    """FAMv2 forward.  `params` is the 8-tuple from init_params() (BN folded)."""
    n, c, h, w = x_nchw.shape
    hw = h * w
    c_pad = _round_up(c, 8)       # sublane density
    hw_pad = _round_up(hw, 128)   # lane density (lane-dense out_spec)

    vmem_cap, n_cores = _tpu_vmem_and_cores()
    if vmem_limit_bytes is None:
        vmem_limit_bytes = int(vmem_cap * 0.85)

    kp = _pad_params(params, c, c_pad, hw, hw_pad)
    weight_bytes = sum(int(a.size) * jnp.dtype(a.dtype).itemsize for a in kp)
    itemsize = jnp.dtype(x_nchw.dtype).itemsize
    mid_c = kp[0].shape[1]
    mid_s = kp[4].shape[1]

    min_grid_steps = 4 * n_cores if n_cores >= 2 else 1
    kernel = _make_kernel(c, hw, c_pad, hw_pad)

    def run(single_buffer_weights):
        w_bufs = 1 if single_buffer_weights else 2
        block_budget = vmem_limit_bytes - w_bufs * weight_bytes - (2 << 20)  # 2 MiB slack
        block_budget = max(block_budget, 4 * c_pad * hw_pad * itemsize)      # >= 1 sample
        b = _choose_block_batch(n, c_pad, hw_pad, itemsize, block_budget, min_grid_steps)
        if max_batch_per_step is not None:
            b = max(1, min(b, int(max_batch_per_step)))
        n_pad = _round_up(n, b)

        x = x_nchw.reshape(n, c, hw)
        if (n_pad, c_pad, hw_pad) != (n, c, hw):
            x = jnp.pad(x, ((0, n_pad - n), (0, c_pad - c), (0, hw_pad - hw)))

        grid = (n_pad // b,)
        x_spec = pl.BlockSpec((b, c_pad, hw_pad), lambda i: (i, 0, 0))
        out_spec = pl.BlockSpec((b, c_pad, hw_pad), lambda i: (i, 0, 0))
        if single_buffer_weights:
            w_specs = [pl.BlockSpec(a.shape, lambda i: (0, 0),
                                    pipeline_mode=pl.Buffered(1)) for a in kp]
        else:
            w_specs = [pl.BlockSpec(a.shape, lambda i: (0, 0)) for a in kp]

        cost = pl.CostEstimate(
            flops=int(n_pad * (4 * c_pad * mid_c + 4 * hw_pad * mid_s + 6 * c_pad * hw_pad)),
            transcendentals=int(n_pad * (c_pad + hw_pad)),
            bytes_accessed=int(2 * n_pad * c_pad * hw_pad * itemsize + weight_bytes),
        )

        out = pl.pallas_call(
            kernel,
            out_shape=jax.ShapeDtypeStruct((n_pad, c_pad, hw_pad), x_nchw.dtype),
            grid=grid,
            in_specs=[x_spec] + w_specs,
            out_specs=out_spec,
            compiler_params=pltpu.CompilerParams(
                dimension_semantics=("parallel",),
                vmem_limit_bytes=int(vmem_limit_bytes),
            ),
            cost_estimate=cost,
        )(x, *kp)
        return jax.block_until_ready(out)

    try:
        out = run(True)
    except Exception:
        # Fallback for JAX builds that reject pipeline_mode / Buffered(1):
        # default double-buffered weights, budgeted accordingly.
        out = run(False)

    return out[:n, :c, :hw].reshape(n, c, h, w)


def _pad_params(params, c, c_pad, hw, hw_pad):
    """Zero-pad weights to the padded C / HW extents (exactness preserved)."""
    w1c, b1c, w2c, b2c, w1s, b1s, w2s, b2s = params
    if c_pad != c:
        w1c = jnp.pad(w1c, ((0, c_pad - c), (0, 0)))
        w2c = jnp.pad(w2c, ((0, 0), (0, c_pad - c)))
        b2c = jnp.pad(b2c, ((0, 0), (0, c_pad - c)))
    if hw_pad != hw:
        w1s = jnp.pad(w1s, ((0, hw_pad - hw), (0, 0)))
        w2s = jnp.pad(w2s, ((0, 0), (0, hw_pad - hw)))
        b2s = jnp.pad(b2s, ((0, 0), (0, hw_pad - hw)))
    return (w1c, b1c, w2c, b2c, w1s, b1s, w2s, b2s)


# ----------------------------------------------------------------------------
# Parameters (BatchNorm folded, inference-mode semantics)
# ----------------------------------------------------------------------------
def fold_batchnorm_into_linear(w1, gamma, beta, running_mean, running_var, eps=1e-5):
    """Fold an inference-mode BatchNorm1d following `x @ w1` into w1's columns
    plus an additive bias.  Pass a trained module's running stats here."""
    scale = gamma / jnp.sqrt(running_var + eps)
    shift = beta - running_mean * scale
    return w1 * scale[None, :], shift[None, :]


def init_params(key, channels, h, w, rc=16, rs=32, L=32):
    """Deterministic synthetic parameters (shapes match the PyTorch module).
    Linear weights are stored as (in_features, out_features)."""
    hw = h * w
    mid_c = max(L, int(channels / rc))
    mid_s = max(L, int(hw / rs))
    ks = jax.random.split(key, 6)

    def lin(k, fan_in, fan_out):
        bound = 1.0 / math.sqrt(fan_in)
        return jax.random.uniform(k, (fan_in, fan_out), jnp.float32, -bound, bound)

    w1c = lin(ks[0], channels, mid_c)                 # Linear(c -> mid_c), no bias
    w2c = lin(ks[1], mid_c, channels)                 # Linear(mid_c -> c)
    b2c = jax.random.uniform(ks[2], (1, channels), jnp.float32,
                             -1.0 / math.sqrt(mid_c), 1.0 / math.sqrt(mid_c))
    w1s = lin(ks[3], hw, mid_s)                       # Linear(hw -> mid_s), no bias
    w2s = lin(ks[4], mid_s, hw)                       # Linear(mid_s -> hw)
    b2s = jax.random.uniform(ks[5], (1, hw), jnp.float32,
                             -1.0 / math.sqrt(mid_s), 1.0 / math.sqrt(mid_s))

    # Fresh-module BN stats (gamma=1, beta=0, mean=0, var=1) -> identity fold.
    # For a trained checkpoint, call fold_batchnorm_into_linear with real stats.
    w1c_f, b1c = fold_batchnorm_into_linear(
        w1c, jnp.ones((mid_c,), jnp.float32), jnp.zeros((mid_c,), jnp.float32),
        jnp.zeros((mid_c,), jnp.float32), jnp.ones((mid_c,), jnp.float32))
    w1s_f, b1s = fold_batchnorm_into_linear(
        w1s, jnp.ones((mid_s,), jnp.float32), jnp.zeros((mid_s,), jnp.float32),
        jnp.zeros((mid_s,), jnp.float32), jnp.ones((mid_s,), jnp.float32))

    return (w1c_f, b1c, w2c, b2c, w1s_f, b1s, w2s, b2s)


def famv2_reference(x_nchw, params):
    """Pure-JAX reference mirroring the PyTorch forward (folded-BN params)."""
    w1c, b1c, w2c, b2c, w1s, b1s, w2s, b2s = params
    n, c, h, w = x_nchw.shape
    x = x_nchw.reshape(n, c, h * w)
    xc = jnp.max(x, axis=2) + jnp.mean(x, axis=2)              # (n, c)
    xs = jnp.max(x, axis=1) + jnp.mean(x, axis=1)              # (n, hw)
    ec = jnp.maximum(xc @ w1c + b1c, 0.0) @ w2c + b2c
    es = jnp.maximum(xs @ w1s + b1s, 0.0) @ w2s + b2s
    attn = jax.nn.sigmoid(ec)[:, :, None, None] * jax.nn.sigmoid(es).reshape(n, 1, h, w)
    return x_nchw * attn


if __name__ == "__main__":
    # Small deterministic test that exercises every padding/masking path:
    #   C=4  -> padded to 8 sublanes (channel-max masking)
    #   HW=100 -> padded to 128 lanes (spatial-max masking, lane-dense store)
    #   N=5 with max_batch_per_step=2 -> N padded to 6, 3-step grid.
    N, C, H, W = 5, 4, 10, 10
    key = jax.random.PRNGKey(0)
    kx, kp = jax.random.split(key)
    x = jax.random.normal(kx, (N, C, H, W), dtype=jnp.float32)
    params = init_params(kp, C, H, W)

    out = famv2_forward(x, params, max_batch_per_step=2)
    out = jax.block_until_ready(out)

    ref = famv2_reference(x, params)
    assert out.shape == (N, C, H, W)
    assert jnp.allclose(out, ref, rtol=1e-5, atol=1e-5), "mismatch vs reference"

    print("KERNEL_OK")
</pallas_src>

<mosaic_0001>
module attributes {stable_mosaic.version = 11 : i64} {
  func.func @kernel(%arg0: i32, %arg1: memref<2x8x128xf32, #tpu.memory_space<vmem>>, %arg2: memref<8x32xf32, #tpu.memory_space<vmem>>, %arg3: memref<1x32xf32, #tpu.memory_space<vmem>>, %arg4: memref<32x8xf32, #tpu.memory_space<vmem>>, %arg5: memref<1x8xf32, #tpu.memory_space<vmem>>, %arg6: memref<128x32xf32, #tpu.memory_space<vmem>>, %arg7: memref<1x32xf32, #tpu.memory_space<vmem>>, %arg8: memref<32x128xf32, #tpu.memory_space<vmem>>, %arg9: memref<1x128xf32, #tpu.memory_space<vmem>>, %arg10: memref<2x8x128xf32, #tpu.memory_space<vmem>>) attributes {dimension_semantics = [#tpu.dimension_semantics<parallel>], iteration_bounds = array<i64: 3>, scalar_prefetch = 0 : i64, scratch_operands = 0 : i64, tpu.core_type = #tpu.core_type<tc>, window_params = [{transform_indices = @transform_0, window_bounds = array<i64: 2, 8, 128>}, {pipeline_mode = #tpu.pipeline_mode<synchronous>, transform_indices = @transform_1, window_bounds = array<i64: 8, 32>}, {pipeline_mode = #tpu.pipeline_mode<synchronous>, transform_indices = @transform_2, window_bounds = array<i64: 1, 32>}, {pipeline_mode = #tpu.pipeline_mode<synchronous>, transform_indices = @transform_3, window_bounds = array<i64: 32, 8>}, {pipeline_mode = #tpu.pipeline_mode<synchronous>, transform_indices = @transform_4, window_bounds = array<i64: 1, 8>}, {pipeline_mode = #tpu.pipeline_mode<synchronous>, transform_indices = @transform_5, window_bounds = array<i64: 128, 32>}, {pipeline_mode = #tpu.pipeline_mode<synchronous>, transform_indices = @transform_6, window_bounds = array<i64: 1, 32>}, {pipeline_mode = #tpu.pipeline_mode<synchronous>, transform_indices = @transform_7, window_bounds = array<i64: 32, 128>}, {pipeline_mode = #tpu.pipeline_mode<synchronous>, transform_indices = @transform_8, window_bounds = array<i64: 1, 128>}, {transform_indices = @transform_9, window_bounds = array<i64: 2, 8, 128>}]} {
    %c0 = arith.constant 0 : index
    %c0_0 = arith.constant 0 : index
    %c0_1 = arith.constant 0 : index
    %0 = vector.load %arg1[%c0, %c0_0, %c0_1] : memref<2x8x128xf32, #tpu.memory_space<vmem>>, vector<2x8x128xf32>
    %1 = tpu.iota {dimensions = array<i32: 2>} : vector<2x8x128xi32>
    %c100_i32 = arith.constant 100 : i32
    %2 = vector.broadcast %c100_i32 : i32 to vector<2x8x128xi32>
    %3 = arith.cmpi slt, %1, %2 : vector<2x8x128xi32>
    %cst = arith.constant 0xFF800000 : f32
    %4 = vector.broadcast %cst : f32 to vector<2x8x128xf32>
    %5 = arith.select %3, %0, %4 : vector<2x8x128xi1>, vector<2x8x128xf32>
    %6 = tpu.iota {dimensions = array<i32: 1>} : vector<2x8x128xi32>
    %c4_i32 = arith.constant 4 : i32
    %7 = vector.broadcast %c4_i32 : i32 to vector<2x8x128xi32>
    %8 = arith.cmpi slt, %6, %7 : vector<2x8x128xi32>
    %cst_2 = arith.constant 0xFF800000 : f32
    %9 = vector.broadcast %cst_2 : f32 to vector<2x8x128xf32>
    %10 = arith.select %8, %0, %9 : vector<2x8x128xi1>, vector<2x8x128xf32>
    %cst_3 = arith.constant dense<0xFF800000> : vector<2x8xf32>
    %11 = vector.multi_reduction <maximumf>, %5, %cst_3 [2] : vector<2x8x128xf32> to vector<2x8xf32>
    %cst_4 = arith.constant dense<0.000000e+00> : vector<2x8xf32>
    %12 = vector.multi_reduction <add>, %0, %cst_4 [2] : vector<2x8x128xf32> to vector<2x8xf32>
    %cst_5 = arith.constant 0.00999999977 : f32
    %13 = vector.broadcast %cst_5 : f32 to vector<2x8xf32>
    %14 = arith.mulf %12, %13 : vector<2x8xf32>
    %15 = arith.addf %11, %14 : vector<2x8xf32>
    %cst_6 = arith.constant dense<0xFF800000> : vector<2x128xf32>
    %16 = vector.multi_reduction <maximumf>, %10, %cst_6 [1] : vector<2x8x128xf32> to vector<2x128xf32>
    %cst_7 = arith.constant dense<0.000000e+00> : vector<2x128xf32>
    %17 = vector.multi_reduction <add>, %0, %cst_7 [1] : vector<2x8x128xf32> to vector<2x128xf32>
    %cst_8 = arith.constant 2.500000e-01 : f32
    %18 = vector.broadcast %cst_8 : f32 to vector<2x128xf32>
    %19 = arith.mulf %17, %18 : vector<2x128xf32>
    %20 = arith.addf %16, %19 : vector<2x128xf32>
    %c0_9 = arith.constant 0 : index
    %c0_10 = arith.constant 0 : index
    %21 = vector.load %arg2[%c0_9, %c0_10] : memref<8x32xf32, #tpu.memory_space<vmem>>, vector<8x32xf32>
    %cst_11 = arith.constant dense<0.000000e+00> : vector<2x32xf32>
    %22 = tpu.matmul %15, %21, %cst_11 {dimension_numbers = #tpu.dot_dimension_numbers<[1], [0], [0], [1], [0, 0, 1, 1], [], []>} : vector<2x8xf32>, vector<8x32xf32>, vector<2x32xf32> -> vector<2x32xf32>
    %c0_12 = arith.constant 0 : index
    %c0_13 = arith.constant 0 : index
    %23 = vector.load %arg3[%c0_12, %c0_13] : memref<1x32xf32, #tpu.memory_space<vmem>>, vector<1x32xf32>
    %24 = vector.broadcast %23 : vector<1x32xf32> to vector<2x32xf32>
    %25 = arith.addf %22, %24 : vector<2x32xf32>
    %cst_14 = arith.constant 0.000000e+00 : f32
    %26 = vector.broadcast %cst_14 : f32 to vector<2x32xf32>
    %27 = arith.maximumf %25, %26 : vector<2x32xf32>
    %c0_15 = arith.constant 0 : index
    %c0_16 = arith.constant 0 : index
    %28 = vector.load %arg4[%c0_15, %c0_16] : memref<32x8xf32, #tpu.memory_space<vmem>>, vector<32x8xf32>
    %cst_17 = arith.constant dense<0.000000e+00> : vector<2x8xf32>
    %29 = tpu.matmul %27, %28, %cst_17 {dimension_numbers = #tpu.dot_dimension_numbers<[1], [0], [0], [1], [0, 0, 1, 1], [], []>} : vector<2x32xf32>, vector<32x8xf32>, vector<2x8xf32> -> vector<2x8xf32>
    %c0_18 = arith.constant 0 : index
    %c0_19 = arith.constant 0 : index
    %30 = vector.load %arg5[%c0_18, %c0_19] : memref<1x8xf32, #tpu.memory_space<vmem>>, vector<1x8xf32>
    %31 = vector.broadcast %30 : vector<1x8xf32> to vector<2x8xf32>
    %32 = arith.addf %29, %31 : vector<2x8xf32>
    %c0_20 = arith.constant 0 : index
    %c0_21 = arith.constant 0 : index
    %33 = vector.load %arg6[%c0_20, %c0_21] : memref<128x32xf32, #tpu.memory_space<vmem>>, vector<128x32xf32>
    %cst_22 = arith.constant dense<0.000000e+00> : vector<2x32xf32>
    %34 = tpu.matmul %20, %33, %cst_22 {dimension_numbers = #tpu.dot_dimension_numbers<[1], [0], [0], [1], [0, 0, 1, 1], [], []>} : vector<2x128xf32>, vector<128x32xf32>, vector<2x32xf32> -> vector<2x32xf32>
    %c0_23 = arith.constant 0 : index
    %c0_24 = arith.constant 0 : index
    %35 = vector.load %arg7[%c0_23, %c0_24] : memref<1x32xf32, #tpu.memory_space<vmem>>, vector<1x32xf32>
    %36 = vector.broadcast %35 : vector<1x32xf32> to vector<2x32xf32>
    %37 = arith.addf %34, %36 : vector<2x32xf32>
    %cst_25 = arith.constant 0.000000e+00 : f32
    %38 = vector.broadcast %cst_25 : f32 to vector<2x32xf32>
    %39 = arith.maximumf %37, %38 : vector<2x32xf32>
    %c0_26 = arith.constant 0 : index
    %c0_27 = arith.constant 0 : index
    %40 = vector.load %arg8[%c0_26, %c0_27] : memref<32x128xf32, #tpu.memory_space<vmem>>, vector<32x128xf32>
    %cst_28 = arith.constant dense<0.000000e+00> : vector<2x128xf32>
    %41 = tpu.matmul %39, %40, %cst_28 {dimension_numbers = #tpu.dot_dimension_numbers<[1], [0], [0], [1], [0, 0, 1, 1], [], []>} : vector<2x32xf32>, vector<32x128xf32>, vector<2x128xf32> -> vector<2x128xf32>
    %c0_29 = arith.constant 0 : index
    %c0_30 = arith.constant 0 : index
    %42 = vector.load %arg9[%c0_29, %c0_30] : memref<1x128xf32, #tpu.memory_space<vmem>>, vector<1x128xf32>
    %43 = vector.broadcast %42 : vector<1x128xf32> to vector<2x128xf32>
    %44 = arith.addf %41, %43 : vector<2x128xf32>
    %45 = arith.negf %32 : vector<2x8xf32>
    %46 = math.exp %45 : vector<2x8xf32>
    %cst_31 = arith.constant 1.000000e+00 : f32
    %47 = vector.broadcast %cst_31 : f32 to vector<2x8xf32>
    %48 = arith.addf %47, %46 : vector<2x8xf32>
    %49 = arith.divf %47, %48 : vector<2x8xf32>
    %50 = arith.negf %44 : vector<2x128xf32>
    %51 = math.exp %50 : vector<2x128xf32>
    %cst_32 = arith.constant 1.000000e+00 : f32
    %52 = vector.broadcast %cst_32 : f32 to vector<2x128xf32>
    %53 = arith.addf %52, %51 : vector<2x128xf32>
    %54 = arith.divf %52, %53 : vector<2x128xf32>
    %55 = vector.shape_cast %49 : vector<2x8xf32> to vector<2x8x1xf32>
    %56 = vector.broadcast %55 : vector<2x8x1xf32> to vector<2x8x128xf32>
    %57 = arith.mulf %0, %56 : vector<2x8x128xf32>
    %58 = vector.shape_cast %54 : vector<2x128xf32> to vector<2x1x128xf32>
    %59 = vector.broadcast %58 : vector<2x1x128xf32> to vector<2x8x128xf32>
    %60 = arith.mulf %57, %59 : vector<2x8x128xf32>
    %c0_33 = arith.constant 0 : index
    %c0_34 = arith.constant 0 : index
    %c0_35 = arith.constant 0 : index
    %61 = vector.load %arg10[%c0_33, %c0_34, %c0_35] : memref<2x8x128xf32, #tpu.memory_space<vmem>>, vector<2x8x128xf32>
    tpu.vector_store %arg10[%c0_33, %c0_34, %c0_35], %60 {strides = array<i32>} : memref<2x8x128xf32, #tpu.memory_space<vmem>>, vector<2x8x128xf32>,
    return
  }
  func.func @transform_0(%arg0: i32) -> (i32, i32, i32) {
    %c0_i32 = arith.constant 0 : i32
    %c0_i32_0 = arith.constant 0 : i32
    %c0_i32_1 = arith.constant 0 : i32
    return %arg0, %c0_i32, %c0_i32_0 : i32, i32, i32
  }
  func.func @transform_1(%arg0: i32) -> (i32, i32) {
    %c0_i32 = arith.constant 0 : i32
    %c0_i32_0 = arith.constant 0 : i32
    %c0_i32_1 = arith.constant 0 : i32
    return %c0_i32, %c0_i32_0 : i32, i32
  }
  func.func @transform_2(%arg0: i32) -> (i32, i32) {
    %c0_i32 = arith.constant 0 : i32
    %c0_i32_0 = arith.constant 0 : i32
    %c0_i32_1 = arith.constant 0 : i32
    return %c0_i32, %c0_i32_0 : i32, i32
  }
  func.func @transform_3(%arg0: i32) -> (i32, i32) {
    %c0_i32 = arith.constant 0 : i32
    %c0_i32_0 = arith.constant 0 : i32
    %c0_i32_1 = arith.constant 0 : i32
    return %c0_i32, %c0_i32_0 : i32, i32
  }
  func.func @transform_4(%arg0: i32) -> (i32, i32) {
    %c0_i32 = arith.constant 0 : i32
    %c0_i32_0 = arith.constant 0 : i32
    %c0_i32_1 = arith.constant 0 : i32
    return %c0_i32, %c0_i32_0 : i32, i32
  }
  func.func @transform_5(%arg0: i32) -> (i32, i32) {
    %c0_i32 = arith.constant 0 : i32
    %c0_i32_0 = arith.constant 0 : i32
    %c0_i32_1 = arith.constant 0 : i32
    return %c0_i32, %c0_i32_0 : i32, i32
  }
  func.func @transform_6(%arg0: i32) -> (i32, i32) {
    %c0_i32 = arith.constant 0 : i32
    %c0_i32_0 = arith.constant 0 : i32
    %c0_i32_1 = arith.constant 0 : i32
    return %c0_i32, %c0_i32_0 : i32, i32
  }
  func.func @transform_7(%arg0: i32) -> (i32, i32) {
    %c0_i32 = arith.constant 0 : i32
    %c0_i32_0 = arith.constant 0 : i32
    %c0_i32_1 = arith.constant 0 : i32
    return %c0_i32, %c0_i32_0 : i32, i32
  }
  func.func @transform_8(%arg0: i32) -> (i32, i32) {
    %c0_i32 = arith.constant 0 : i32
    %c0_i32_0 = arith.constant 0 : i32
    %c0_i32_1 = arith.constant 0 : i32
    return %c0_i32, %c0_i32_0 : i32, i32
  }
  func.func @transform_9(%arg0: i32) -> (i32, i32, i32) {
    %c0_i32 = arith.constant 0 : i32
    %c0_i32_0 = arith.constant 0 : i32
    %c0_i32_1 = arith.constant 0 : i32
    return %arg0, %c0_i32, %c0_i32_0 : i32, i32, i32
  }
}

module attributes {stable_mosaic.version = 11 : i64} {
  func.func @kernel(%arg0: i32, %arg1: memref<2x8x128xf32, #tpu.memory_space<vmem>>, %arg2: memref<8x32xf32, #tpu.memory_space<vmem>>, %arg3: memref<1x32xf32, #tpu.memory_space<vmem>>, %arg4: memref<32x8xf32, #tpu.memory_space<vmem>>, %arg5: memref<1x8xf32, #tpu.memory_space<vmem>>, %arg6: memref<128x32xf32, #tpu.memory_space<vmem>>, %arg7: memref<1x32xf32, #tpu.memory_space<vmem>>, %arg8: memref<32x128xf32, #tpu.memory_space<vmem>>, %arg9: memref<1x128xf32, #tpu.memory_space<vmem>>, %arg10: memref<2x8x128xf32, #tpu.memory_space<vmem>>) attributes {dimension_semantics = [#tpu.dimension_semantics<parallel>], iteration_bounds = array<i64: 3>, scalar_prefetch = 0 : i64, scratch_operands = 0 : i64, tpu.core_type = #tpu.core_type<tc>, window_params = [{transform_indices = @transform_0, window_bounds = array<i64: 2, 8, 128>}, {pipeline_mode = #tpu.pipeline_mode<synchronous>, transform_indices = @transform_1, window_bounds = array<i64: 8, 32>}, {pipeline_mode = #tpu.pipeline_mode<synchronous>, transform_indices = @transform_2, window_bounds = array<i64: 1, 32>}, {pipeline_mode = #tpu.pipeline_mode<synchronous>, transform_indices = @transform_3, window_bounds = array<i64: 32, 8>}, {pipeline_mode = #tpu.pipeline_mode<synchronous>, transform_indices = @transform_4, window_bounds = array<i64: 1, 8>}, {pipeline_mode = #tpu.pipeline_mode<synchronous>, transform_indices = @transform_5, window_bounds = array<i64: 128, 32>}, {pipeline_mode = #tpu.pipeline_mode<synchronous>, transform_indices = @transform_6, window_bounds = array<i64: 1, 32>}, {pipeline_mode = #tpu.pipeline_mode<synchronous>, transform_indices = @transform_7, window_bounds = array<i64: 32, 128>}, {pipeline_mode = #tpu.pipeline_mode<synchronous>, transform_indices = @transform_8, window_bounds = array<i64: 1, 128>}, {transform_indices = @transform_9, window_bounds = array<i64: 2, 8, 128>}]} {
    %c0 = arith.constant 0 : index
    %c0_0 = arith.constant 0 : index
    %c0_1 = arith.constant 0 : index
    %0 = vector.load %arg1[%c0, %c0_0, %c0_1] : memref<2x8x128xf32, #tpu.memory_space<vmem>>, vector<2x8x128xf32>
    %1 = tpu.iota {dimensions = array<i32: 2>} : vector<2x8x128xi32>
    %c100_i32 = arith.constant 100 : i32
    %2 = vector.broadcast %c100_i32 : i32 to vector<2x8x128xi32>
    %3 = arith.cmpi slt, %1, %2 : vector<2x8x128xi32>
    %cst = arith.constant 0xFF800000 : f32
    %4 = vector.broadcast %cst : f32 to vector<2x8x128xf32>
    %5 = arith.select %3, %0, %4 : vector<2x8x128xi1>, vector<2x8x128xf32>
    %6 = tpu.iota {dimensions = array<i32: 1>} : vector<2x8x128xi32>
    %c4_i32 = arith.constant 4 : i32
    %7 = vector.broadcast %c4_i32 : i32 to vector<2x8x128xi32>
    %8 = arith.cmpi slt, %6, %7 : vector<2x8x128xi32>
    %cst_2 = arith.constant 0xFF800000 : f32
    %9 = vector.broadcast %cst_2 : f32 to vector<2x8x128xf32>
    %10 = arith.select %8, %0, %9 : vector<2x8x128xi1>, vector<2x8x128xf32>
    %cst_3 = arith.constant dense<0xFF800000> : vector<2x8xf32>
    %11 = vector.multi_reduction <maximumf>, %5, %cst_3 [2] : vector<2x8x128xf32> to vector<2x8xf32>
    %cst_4 = arith.constant dense<0.000000e+00> : vector<2x8xf32>
    %12 = vector.multi_reduction <add>, %0, %cst_4 [2] : vector<2x8x128xf32> to vector<2x8xf32>
    %cst_5 = arith.constant 0.00999999977 : f32
    %13 = vector.broadcast %cst_5 : f32 to vector<2x8xf32>
    %14 = arith.mulf %12, %13 : vector<2x8xf32>
    %15 = arith.addf %11, %14 : vector<2x8xf32>
    %cst_6 = arith.constant dense<0xFF800000> : vector<2x128xf32>
    %16 = vector.multi_reduction <maximumf>, %10, %cst_6 [1] : vector<2x8x128xf32> to vector<2x128xf32>
    %cst_7 = arith.constant dense<0.000000e+00> : vector<2x128xf32>
    %17 = vector.multi_reduction <add>, %0, %cst_7 [1] : vector<2x8x128xf32> to vector<2x128xf32>
    %cst_8 = arith.constant 2.500000e-01 : f32
    %18 = vector.broadcast %cst_8 : f32 to vector<2x128xf32>
    %19 = arith.mulf %17, %18 : vector<2x128xf32>
    %20 = arith.addf %16, %19 : vector<2x128xf32>
    %c0_9 = arith.constant 0 : index
    %c0_10 = arith.constant 0 : index
    %21 = vector.load %arg2[%c0_9, %c0_10] : memref<8x32xf32, #tpu.memory_space<vmem>>, vector<8x32xf32>
    %cst_11 = arith.constant dense<0.000000e+00> : vector<2x32xf32>
    %22 = tpu.matmul %15, %21, %cst_11 {dimension_numbers = #tpu.dot_dimension_numbers<[1], [0], [0], [1], [0, 0, 1, 1], [], []>} : vector<2x8xf32>, vector<8x32xf32>, vector<2x32xf32> -> vector<2x32xf32>
    %c0_12 = arith.constant 0 : index
    %c0_13 = arith.constant 0 : index
    %23 = vector.load %arg3[%c0_12, %c0_13] : memref<1x32xf32, #tpu.memory_space<vmem>>, vector<1x32xf32>
    %24 = vector.broadcast %23 : vector<1x32xf32> to vector<2x32xf32>
    %25 = arith.addf %22, %24 : vector<2x32xf32>
    %cst_14 = arith.constant 0.000000e+00 : f32
    %26 = vector.broadcast %cst_14 : f32 to vector<2x32xf32>
    %27 = arith.maximumf %25, %26 : vector<2x32xf32>
    %c0_15 = arith.constant 0 : index
    %c0_16 = arith.constant 0 : index
    %28 = vector.load %arg4[%c0_15, %c0_16] : memref<32x8xf32, #tpu.memory_space<vmem>>, vector<32x8xf32>
    %cst_17 = arith.constant dense<0.000000e+00> : vector<2x8xf32>
    %29 = tpu.matmul %27, %28, %cst_17 {dimension_numbers = #tpu.dot_dimension_numbers<[1], [0], [0], [1], [0, 0, 1, 1], [], []>} : vector<2x32xf32>, vector<32x8xf32>, vector<2x8xf32> -> vector<2x8xf32>
    %c0_18 = arith.constant 0 : index
    %c0_19 = arith.constant 0 : index
    %30 = vector.load %arg5[%c0_18, %c0_19] : memref<1x8xf32, #tpu.memory_space<vmem>>, vector<1x8xf32>
    %31 = vector.broadcast %30 : vector<1x8xf32> to vector<2x8xf32>
    %32 = arith.addf %29, %31 : vector<2x8xf32>
    %c0_20 = arith.constant 0 : index
    %c0_21 = arith.constant 0 : index
    %33 = vector.load %arg6[%c0_20, %c0_21] : memref<128x32xf32, #tpu.memory_space<vmem>>, vector<128x32xf32>
    %cst_22 = arith.constant dense<0.000000e+00> : vector<2x32xf32>
    %34 = tpu.matmul %20, %33, %cst_22 {dimension_numbers = #tpu.dot_dimension_numbers<[1], [0], [0], [1], [0, 0, 1, 1], [], []>} : vector<2x128xf32>, vector<128x32xf32>, vector<2x32xf32> -> vector<2x32xf32>
    %c0_23 = arith.constant 0 : index
    %c0_24 = arith.constant 0 : index
    %35 = vector.load %arg7[%c0_23, %c0_24] : memref<1x32xf32, #tpu.memory_space<vmem>>, vector<1x32xf32>
    %36 = vector.broadcast %35 : vector<1x32xf32> to vector<2x32xf32>
    %37 = arith.addf %34, %36 : vector<2x32xf32>
    %cst_25 = arith.constant 0.000000e+00 : f32
    %38 = vector.broadcast %cst_25 : f32 to vector<2x32xf32>
    %39 = arith.maximumf %37, %38 : vector<2x32xf32>
    %c0_26 = arith.constant 0 : index
    %c0_27 = arith.constant 0 : index
    %40 = vector.load %arg8[%c0_26, %c0_27] : memref<32x128xf32, #tpu.memory_space<vmem>>, vector<32x128xf32>
    %cst_28 = arith.constant dense<0.000000e+00> : vector<2x128xf32>
    %41 = tpu.matmul %39, %40, %cst_28 {dimension_numbers = #tpu.dot_dimension_numbers<[1], [0], [0], [1], [0, 0, 1, 1], [], []>} : vector<2x32xf32>, vector<32x128xf32>, vector<2x128xf32> -> vector<2x128xf32>
    %c0_29 = arith.constant 0 : index
    %c0_30 = arith.constant 0 : index
    %42 = vector.load %arg9[%c0_29, %c0_30] : memref<1x128xf32, #tpu.memory_space<vmem>>, vector<1x128xf32>
    %43 = vector.broadcast %42 : vector<1x128xf32> to vector<2x128xf32>
    %44 = arith.addf %41, %43 : vector<2x128xf32>
    %45 = arith.negf %32 : vector<2x8xf32>
    %46 = math.exp %45 : vector<2x8xf32>
    %cst_31 = arith.constant 1.000000e+00 : f32
    %47 = vector.broadcast %cst_31 : f32 to vector<2x8xf32>
    %48 = arith.addf %47, %46 : vector<2x8xf32>
    %49 = arith.divf %47, %48 : vector<2x8xf32>
    %50 = arith.negf %44 : vector<2x128xf32>
    %51 = math.exp %50 : vector<2x128xf32>
    %cst_32 = arith.constant 1.000000e+00 : f32
    %52 = vector.broadcast %cst_32 : f32 to vector<2x128xf32>
    %53 = arith.addf %52, %51 : vector<2x128xf32>
    %54 = arith.divf %52, %53 : vector<2x128xf32>
    %55 = vector.shape_cast %49 : vector<2x8xf32> to vector<2x8x1xf32>
    %56 = vector.broadcast %55 : vector<2x8x1xf32> to vector<2x8x128xf32>
    %57 = arith.mulf %0, %56 : vector<2x8x128xf32>
    %58 = vector.shape_cast %54 : vector<2x128xf32> to vector<2x1x128xf32>
    %59 = vector.broadcast %58 : vector<2x1x128xf32> to vector<2x8x128xf32>
    %60 = arith.mulf %57, %59 : vector<2x8x128xf32>
    %c0_33 = arith.constant 0 : index
    %c0_34 = arith.constant 0 : index
    %c0_35 = arith.constant 0 : index
    %61 = vector.load %arg10[%c0_33, %c0_34, %c0_35] : memref<2x8x128xf32, #tpu.memory_space<vmem>>, vector<2x8x128xf32>
    tpu.vector_store %arg10[%c0_33, %c0_34, %c0_35], %60 {strides = array<i32>} : memref<2x8x128xf32, #tpu.memory_space<vmem>>, vector<2x8x128xf32>,
    return
  }
  func.func @transform_0(%arg0: i32) -> (i32, i32, i32) {
    %c0_i32 = arith.constant 0 : i32
    %c0_i32_0 = arith.constant 0 : i32
    %c0_i32_1 = arith.constant 0 : i32
    return %arg0, %c0_i32, %c0_i32_0 : i32, i32, i32
  }
  func.func @transform_1(%arg0: i32) -> (i32, i32) {
    %c0_i32 = arith.constant 0 : i32
    %c0_i32_0 = arith.constant 0 : i32
    %c0_i32_1 = arith.constant 0 : i32
    return %c0_i32, %c0_i32_0 : i32, i32
  }
  func.func @transform_2(%arg0: i32) -> (i32, i32) {
    %c0_i32 = arith.constant 0 : i32
    %c0_i32_0 = arith.constant 0 : i32
    %c0_i32_1 = arith.constant 0 : i32
    return %c0_i32, %c0_i32_0 : i32, i32
  }
  func.func @transform_3(%arg0: i32) -> (i32, i32) {
    %c0_i32 = arith.constant 0 : i32
    %c0_i32_0 = arith.constant 0 : i32
    %c0_i32_1 = arith.constant 0 : i32
    return %c0_i32, %c0_i32_0 : i32, i32
  }
  func.func @transform_4(%arg0: i32) -> (i32, i32) {
    %c0_i32 = arith.constant 0 : i32
    %c0_i32_0 = arith.constant 0 : i32
    %c0_i32_1 = arith.constant 0 : i32
    return %c0_i32, %c0_i32_0 : i32, i32
  }
  func.func @transform_5(%arg0: i32) -> (i32, i32) {
    %c0_i32 = arith.constant 0 : i32
    %c0_i32_0 = arith.constant 0 : i32
    %c0_i32_1 = arith.constant 0 : i32
    return %c0_i32, %c0_i32_0 : i32, i32
  }
  func.func @transform_6(%arg0: i32) -> (i32, i32) {
    %c0_i32 = arith.constant 0 : i32
    %c0_i32_0 = arith.constant 0 : i32
    %c0_i32_1 = arith.constant 0 : i32
    return %c0_i32, %c0_i32_0 : i32, i32
  }
  func.func @transform_7(%arg0: i32) -> (i32, i32) {
    %c0_i32 = arith.constant 0 : i32
    %c0_i32_0 = arith.constant 0 : i32
    %c0_i32_1 = arith.constant 0 : i32
    return %c0_i32, %c0_i32_0 : i32, i32
  }
  func.func @transform_8(%arg0: i32) -> (i32, i32) {
    %c0_i32 = arith.constant 0 : i32
    %c0_i32_0 = arith.constant 0 : i32
    %c0_i32_1 = arith.constant 0 : i32
    return %c0_i32, %c0_i32_0 : i32, i32
  }
  func.func @transform_9(%arg0: i32) -> (i32, i32, i32) {
    %c0_i32 = arith.constant 0 : i32
    %c0_i32_0 = arith.constant 0 : i32
    %c0_i32_1 = arith.constant 0 : i32
    return %arg0, %c0_i32, %c0_i32_0 : i32, i32, i32
  }
}

</mosaic_0001>

<bundles_post_ra>
// kernel: tpu_custom_call.1
= control target key start
LH: loop header
LB: loop body
LE: loop exit
PB: predicated region body
PF: predicated region fallthrough
CT: control target
= control target key end

     0   :  { %14 = vsyncpa [#allocation3], 0  ;;  %s1052_s0 = inlined_call_operand.vmem [shape: f32[6,8,128], index: 0, kind: input, shape index: {}]   ;;  %s1053_s1 = inlined_call_operand.vmem [shape: f32[8,32], index: 1, kind: input, shape index: {}]   ;;  %s1054_s2 = inlined_call_operand.vmem [shape: f32[1,32], index: 2, kind: input, shape index: {}]   ;;  %s1055_s3 = inlined_call_operand.vmem [shape: f32[32,8], index: 3, kind: input, shape index: {}]   ;;  %s1056_s4 = inlined_call_operand.vmem [shape: f32[1,8], index: 4, kind: input, shape index: {}]   ;;  %s1057_s5 = inlined_call_operand.vmem [shape: f32[128,32], index: 5, kind: input, shape index: {}]   ;;  %s1058_s6 = inlined_call_operand.vmem [shape: f32[1,32], index: 6, kind: input, shape index: {}]   ;;  %s1059_s7 = inlined_call_operand.vmem [shape: f32[32,128], index: 7, kind: input, shape index: {}]   ;;  %s1060_s8 = inlined_call_operand.vmem [shape: f32[1,128], index: 8, kind: input, shape index: {}]   ;;  %s1061_s9 = inlined_call_operand.hbm [shape: f32[6,8,128], index: 9, kind: output, shape index: {}]  }
   0x1   :  { %16 = vsyncpa [#allocation3 + $0x1], 0  ;;  %s860_s30 = smov 0   ;;  %s862_s10 = smov 0  }
   0x2   :  { %s864_s11 = smov 0   ;;  %s866_s12 = smov 0  }
   0x3 LB: > { %s881_s13 = sadd.s32 4294967295, %s806_s12   ;;  %s671_s14 = sadd.s32 4294967294, %s806_s12   ;;  %s806_s12 = sphi %s866_s12, %s1067_s12   ;;  %s802_s11 = sphi %s864_s11, %s1066_s11   ;;  %s798_s10 = sphi %s862_s10, %s1065_s10   ;;  %s794_s30 = sphi %s860_s30, %s1064_s30  }
   0x4   : > { %s885_s15 = sadd.s32 1, %s806_s12   ;;  %s223_s16 = sadd.s32 1, %s802_s11 }
   0x5   : > { %s220_s17 = ssub.s32 %s806_s12, %s885_s15  ;;  %p233_p0 = scmp.ne.s32.totalorder %s802_s11, %s798_s10 }
   0x6   : > { %p221_p1 = scmp.eq.s32.totalorder %s220_s17, 0  ;;  %p234_p2 = scmp.eq.s32.totalorder %s881_s13, 2 }
   0x7   : > { %p239_p3 = scmp.ne.s32.totalorder %s798_s10, %s794_s30  ;;  %p240_p4 = scmp.eq.s32.totalorder %s671_s14, 2 }
   0x8   : > { %s896_s18 = scalar_select %p221_p1, %s802_s11, %s223_s16  }
   0x9   : > { %p898_p5 = por %p234_p2, %p233_p0  ;;  %p902_p6 = por %p240_p4, %p239_p3 }
   0xa   : > { %p674_p7 = scmp.ge.s32.totalorder %s806_s12, 1  ;;  %p291_p8 = scmp.lt.s32.totalorder %s806_s12, 4 }
   0xc   : > { %p292_p9 = pnand %p674_p7, %p291_p8 }
   0xd   : > { %s676_s21 = sshll.u32 (!%p292_p9), %s881_s13, 1  ;;  %s324_s24 = sand.u32 (!%p292_p9), 1, %s798_s10  }
   0xe   : > { %295 = sbr.rel (%p292_p9) target bundleno = 550 (0x226), region = 56  ;;  %p328_p10 = scmp.lt.s32.totalorder (!%p292_p9), %s676_s21, 5 }
   0xf   : > { %s688_s26 = sshll.u32 (!%p292_p9), %s881_s13, 4  ;;  %s594_s13 = scalar_lea.sflag (!%p292_p9), [#allocation3], %s324_s24 }
  0x10   : > { %s605_s29 = scalar_lea.hbm (!%p292_p9), %s1061_s9, %s688_s26  ;;  %s764_s26 = scalar_lea.hbm (!%p292_p9), %s1061_s9, 48 }
  0x11   : > { %s608_s17 = sshll.u32 (!%p292_p9), %s605_s29, 4  ;;  %s609_s17 = int_to_ptr.hbm [resolvable:$true] %s608_s17 }
  0x13   : > { %v336_v0 = vlaneseq  ;;  %s1069_s21 = smov (!%p328_p10, %s676_s21), 5  ;;  %v386_v7 = vld [vmem:[%s1053_s1] sm:$0xff]  ;;  %v468_v8 = vld [vmem:[%s1057_s5 + $0x78] sm:$0xff]  ;;  %v467_v9 = vld [vmem:[%s1057_s5 + $0x70] sm:$0xff]  ;;  %vm395_vm2 = vcmask 1041409   ;;  %vm397_vm3 = vcmask 64512  }
  0x14   : > { %s677_s22 = sshll.u32 %s1069_s21, 3  ;;  %415 = vmatpush.msra.mxu0 %v386_v7  ;;  %477 = vmatpush.msra.mxu2 %v468_v8  ;;  %v466_v14 = vld [vmem:[%s1057_s5 + $0x68] sm:$0xff]  ;;  %v465_v19 = vld [vmem:[%s1057_s5 + $0x60] sm:$0xff]  ;;  %v424_v24 = vld [vmem:[%s1055_s3 + $0x18] sm:$0xff]  ;;  %vm429_vm4 = vcmask 261120   ;;  %s758_s21 = sshra.s32 %s609_s17, 4  ;;  %s759_s21 = int_to_ptr.hbm [resolvable:$true] %s758_s21 }
  0x15   : > { %v909_v1 = vand.u32 127, %v336_v0  ;;  %v342_v2 = vshrl.u32 %v336_v0, 7  ;;  %s331_s25 = scalar_lea.vmem %s1052_s0, %s677_s22  ;;  %v464_v25 = vld [vmem:[%s1057_s5 + $0x58] sm:$0xff]  ;;  %445 = vmatpush.msra.mxu1 %v424_v24  ;;  %v463_v26 = vld [vmem:[%s1057_s5 + $0x50] sm:$0xff]  ;;  %v462_v31 = vld [vmem:[%s1057_s5 + $0x48] sm:$0xff]  ;;  %s760_s22 = scalar_lea.hbm %s759_s21, 16 }
  0x16   : > { %v915_v3 = vld [vmem:[%s331_s25] sm:$0xff]  ;;  %v919_v5 = vld [vmem:[%s331_s25 + $0x8] sm:$0xff]  ;;  %478 = vmatpush.msra.mxu2 %v467_v9  ;;  %v460_v37 = vld [vmem:[%s1057_s5 + $0x38] sm:$0xff]  ;;  %s675_s25 = sshll.u32 %s324_s24, 4  ;;  %p761_p11 = scmp.ne.s32.totalorder %s759_s21, %s760_s22 }
  0x17   : > { %730 = vset.pattern.permute.xlu2 %v342_v2  ;;  %731 = vset.pattern.permute.xlu0 %v342_v2  ;;  %vm338_vm0 = vcmp.lt.s32.totalorder %v909_v1, 100  ;;  %vm343_vm1 = vcmp.lt.s32.totalorder %v342_v2, 4  ;;  %v370_v10 = vrot.slane %v915_v3, 4  ;;  %v376_v11 = vrot.slane %v919_v5, 4  ;;  %v461_v32 = vld [vmem:[%s1057_s5 + $0x40] sm:$0xff]  ;;  %v459_v39 = vld [vmem:[%s1057_s5 + $0x30] sm:$0xff]  ;;  %p765_p0 = scmp.lt.s32.totalorder %s759_s21, %s1061_s9  ;;  %p766_p1 = scmp.lt.s32.totalorder %s764_s26, %s760_s22 }
  0x18   : > { %350 = vadd.xlane.f32.xlu0 %v915_v3  ;;  %v339_v4 = vsel %vm338_vm0, %v915_v3, -inf  ;;  %v340_v6 = vsel %vm338_vm0, %v919_v5, -inf  ;;  %v344_v12 = vsel %vm343_vm1, %v915_v3, -inf  ;;  %v345_v13 = vsel %vm343_vm1, %v919_v5, -inf  ;;  %479 = vmatpush.msra.mxu2 %v466_v14  ;;  %v458_v45 = vld [vmem:[%s1057_s5 + $0x28] sm:$0xff]  ;;  %v457_v46 = vld [vmem:[%s1057_s5 + $0x20] sm:$0xff]  ;;  %p762_p12 = pnand %p761_p11, %p898_p5 }
  0x19   : > { %346 = vmax.xlane.f32.xlu1 %v339_v4  ;;  %v358_v15 = vrot.slane %v344_v12, 4  ;;  %v364_v16 = vrot.slane %v345_v13, 4  ;;  %v371_v17 = vadd.f32 %v370_v10, %v915_v3  ;;  %v377_v18 = vadd.f32 %v376_v11, %v919_v5  ;;  %v456_v52 = vld [vmem:[%s1057_s5 + $0x18] sm:$0xff]  ;;  %v455_v54 = vld [vmem:[%s1057_s5 + $0x10] sm:$0xff]  ;;  %v454_v60 = vld [vmem:[%s1057_s5 + $0x8] sm:$0xff]  ;;  %s326_s14 = scalar_lea.vmem [#allocation2], %s675_s25  ;;  %p767_p2 = por %p766_p1, %p765_p0 }
  0x1a   : > { %480 = vmatpush.msra.mxu2 %v465_v19  ;;  %v453_v62 = vld [vmem:[%s1057_s5] sm:$0xff]  ;;  %v422_v7 = vld [vmem:[%s1055_s3 + $0x8] sm:$0xff]  ;;  %v501_v8 = vld [vmem:[%s1059_s7 + $0x18] sm:$0xff]  ;;  %s606_s16 = sshll.u32 %s326_s14, 4  ;;  %p763_p13 = pneg %p762_p12  ;;  %s607_s16 = int_to_ptr.vmem [resolvable:$true] %s606_s16 }
  0x1b   : > { %v359_v20 = vmax.f32 %v344_v12, %v358_v15  ;;  %v365_v21 = vmax.f32 %v345_v13, %v364_v16  ;;  %v372_v22 = vrot.slane %v371_v17, 2  ;;  %v378_v23 = vrot.slane %v377_v18, 2  ;;  %521 = vmatpush.msra.mxu3 %v501_v8  ;;  %v500_v9 = vld [vmem:[%s1059_s7 + $0x10] sm:$0xff]  ;;  %v499_v10 = vld [vmem:[%s1059_s7 + $0x8] sm:$0xff]  ;;  %v498_v11 = vld [vmem:[%s1059_s7] sm:$0xff] }
  0x1c   : > { %481 = vmatpush.msra.mxu2 %v464_v25  ;;  %v732_v12 = vld [vmem:[%s1054_s2] ss:$0 sm:$0xff]  ;;  %p768_p3 = pnand %p767_p2, %p763_p13 }
  0x1d   : > { %v360_v27 = vrot.slane %v359_v20, 2  ;;  %v366_v28 = vrot.slane %v365_v21, 2  ;;  %v373_v29 = vadd.f32 %v372_v22, %v371_v17  ;;  %v379_v30 = vadd.f32 %v378_v23, %v377_v18  ;;  %522 = vmatpush.msra.mxu3 %v500_v9  ;;  %v733_v16 = vld [vmem:[%s1058_s6] ss:$0 sm:$0xff] }
  0x1e   : > { %482 = vmatpush.msra.mxu2 %v463_v26 }
  0x1f   : > { %v361_v33 = vmax.f32 %v359_v20, %v360_v27  ;;  %v367_v34 = vmax.f32 %v365_v21, %v366_v28  ;;  %v374_v35 = vrot.slane %v373_v29, 1  ;;  %v380_v36 = vrot.slane %v379_v30, 1  ;;  %523 = vmatpush.msra.mxu3 %v499_v10  ;;  %v734_v20 = vld [vmem:[%s1056_s4] ss:$0 sm:$0xff] }
  0x20   : > { %352 = vadd.xlane.f32.xlu0 %v919_v5  ;;  %483 = vmatpush.msra.mxu2 %v462_v31 }
  0x21   : > { %348 = vmax.xlane.f32.xlu1 %v340_v6  ;;  %v362_v40 = vrot.slane %v361_v33, 1  ;;  %v368_v42 = vrot.slane %v367_v34, 1  ;;  %v375_v43 = vadd.f32 %v374_v35, %v373_v29  ;;  %v381_v44 = vadd.f32 %v380_v36, %v379_v30  ;;  %v423_v6 = vld [vmem:[%s1055_s3 + $0x10] sm:$0xff]  ;;  %524 = vmatpush.msra.mxu3 %v498_v11 }
  0x22   : > { %484 = vmatpush.msra.mxu2 %v461_v32  ;;  %446 = vmatpush.msra.mxu1 %v423_v6 }
  0x23   : > { %v363_v47 = vmax.f32 %v361_v33, %v362_v40  ;;  %v369_v49 = vmax.f32 %v367_v34, %v368_v42  ;;  %v382_v50 = vmul.f32 0.25, %v375_v43  ;;  %v383_v51 = vmul.f32 0.25, %v381_v44 }
  0x24   : > { %485 = vmatpush.msra.mxu2 %v460_v37  ;;  %447 = vmatpush.msra.mxu1 %v422_v7 }
  0x25   : > { %v384_v58 = vadd.f32 %v382_v50, %v363_v47  ;;  %v385_v59 = vadd.f32 %v383_v51, %v369_v49 }
  0x26   : > { %486 = vmatpush.msra.mxu2 %v459_v39 }
  0x27   : > { %v475_v2 = vsel %vm395_vm2, %v385_v59, %v384_v58 }
  0x28   : > { %487 = vmatpush.msra.mxu2 %v458_v45 }
  0x2a   : > { %488 = vmatpush.msra.mxu2 %v457_v46 }
  0x2c   : > { %489 = vmatpush.msra.mxu2 %v456_v52 }
  0x2e   : > { %490 = vmatpush.msra.mxu2 %v455_v54 }
  0x30   : > { %491 = vmatpush.msra.mxu2 %v454_v60 }
  0x32   : > { %492 = vmatpush.msra.mxu2 %v453_v62 }
  0x33   : > { %493 = vmatmul.f32.vlgmr.msra.gmra.mxu2 %v475_v2 }
  0x8b   : > { %v351_v38 = vpop.xlane.xlu0 %350 }
  0x8c   : > { %v347_v41 = vpop.xlane.xlu1 %346  ;;  %v354_v48 = vmul.f32 0.01, %v351_v38  ;;  %v735_v38 = vld [vmem:[%s1060_s8] ss:$0 sm:$0xff] }
  0x8e   : > { %v356_v55 = vadd.f32 %v354_v48, %v347_v41 }
  0x90   : > { %v393_v63 = vperm.slane %v356_v55, %v909_v1 }
  0x93   : > { %v353_v53 = vpop.xlane.xlu0 %352 }
  0x94   : > { %v355_v56 = vmul.f32 0.01, %v353_v53  ;;  %v349_v57 = vpop.xlane.xlu1 %348 }
  0x96   : > { %v357_v61 = vadd.f32 %v355_v56, %v349_v57 }
  0x98   : > { %v394_v0 = vperm.slane %v357_v61, %v909_v1  ;;  %v421_v1 = vld [vmem:[%s1055_s3] sm:$0xff] }
  0x99   : > { %448 = vmatpush.msra.mxu1 %v421_v1 }
  0x9a   : > { %v396_v4 = vsel %vm395_vm2, %v394_v0, %v393_v63 }
  0x9b   : > { %678 = vmatmul.msk.f32.vlgmr.msra.gmra.mxu0 %vm397_vm3, %v396_v4 }
  0xb6   : > { %v494_v17 = vpop.f32.mrf.mxu2 }
  0xb7   : > { %v495_v18 = vadd.f32 %v733_v16, %v494_v17 }
  0xb9   : > { %v497_v19 = vmax.f32 %v495_v18, 0.0 }
  0xbb   : > { %680 = vmatmul.msk.f32.vlgmr.msra.gmra.mxu3 %vm429_vm4, %v497_v19 }
 0x118   : > { %v417_v13 = vpop.f32.mrf.mxu0 }
 0x119   : > { %v418_v14 = vadd.f32 %v732_v12, %v417_v13 }
 0x11b   : > { %v420_v15 = vmax.f32 %v418_v14, 0.0 }
 0x11d   : > { %679 = vmatmul.msk.f32.vlgmr.msra.gmra.mxu1 %vm429_vm4, %v420_v15 }
 0x13e   : > { %v526_v39 = vpop.f32.mrf.mxu3 }
 0x13f   : > { %v527_v40 = vadd.f32 %v735_v38, %v526_v39 }
 0x141   : > { %v682_v41 = vmul.f32 -1.442695, %v527_v40 }
 0x19a   : > { %v450_v21 = vpop.f32.mrf.mxu1 }
 0x19b   : > { %v451_v22 = vadd.f32 %v734_v20, %v450_v21 }
 0x19d   : > { %v681_v23 = vmul.f32 -1.442695, %v451_v22 }
 0x19f   : > { %736 = vpow2.f32 %v681_v23 }
 0x1a5   : > { %v737_v24 = vpop.eup %736 }
 0x1a6   : > { %v532_v25 = vadd.f32 1.0, %v737_v24 }
 0x1a8   : > { %738 = vrcp.f32 %v532_v25  ;;  %v544_v29 = vand.u32 2147483648, %v532_v25  ;;  %v542_v31 = vand.u32 2147483647, %v532_v25  ;;  %vm538_vm6 = vweird.f32 %v532_v25 }
 0x1a9   : > { %740 = vpow2.f32 %v682_v41 }
 0x1aa   : > { %v545_v33 = vor.u32 1.1754944e-38, %v544_v29  ;;  %vm543_vm8 = vcmp.eq.f32.partialorder %v542_v31, 8.507059e+37 }
 0x1ae   : > { %v739_v26 = vpop.eup %738 }
 0x1af   : > { %v534_v27 = vmul.f32 %v739_v26, %v532_v25  ;;  %vm539_vm5 = vweird.f32 %v739_v26  ;;  %v741_v42 = vpop.eup %740 }
 0x1b0   : > { %vm540_vm7 = vmor %vm538_vm6, %vm539_vm5  ;;  %v551_v43 = vadd.f32 1.0, %v741_v42 }
 0x1b1   : > { %v535_v28 = vsub.f32 1.0, %v534_v27 }
 0x1b2   : > { %742 = vrcp.f32 %v551_v43  ;;  %vm557_vm9 = vweird.f32 %v551_v43  ;;  %v563_v48 = vand.u32 2147483648, %v551_v43  ;;  %v561_v50 = vand.u32 2147483647, %v551_v43 }
 0x1b3   : > { %v536_v30 = vmul.f32 %v739_v26, %v535_v28 }
 0x1b4   : > { %v564_v51 = vor.u32 1.1754944e-38, %v563_v48  ;;  %vm562_vm12 = vcmp.eq.f32.partialorder %v561_v50, 8.507059e+37 }
 0x1b5   : > { %v537_v32 = vadd.f32 %v739_v26, %v536_v30 }
 0x1b7   : > { %v541_v34 = vsel %vm540_vm7, %v739_v26, %v537_v32 }
 0x1b8   : > { %v546_v35 = vsel %vm543_vm8, %v545_v33, %v541_v34  ;;  %v743_v44 = vpop.eup %742 }
 0x1b9   : > { %v567_v36 = vperm.slane %v546_v35, 0  ;;  %v574_v37 = vperm.slane %v546_v35, 1  ;;  %v553_v45 = vmul.f32 %v743_v44, %v551_v43  ;;  %vm558_vm10 = vweird.f32 %v743_v44 }
 0x1ba   : > { %vm559_vm11 = vmor %vm557_vm9, %vm558_vm10 }
 0x1bb   : > { %572 = vperm.xlu2 %730, %v567_v36   ;;  %v554_v46 = vsub.f32 1.0, %v553_v45 }
 0x1bd   : > { %v555_v47 = vmul.f32 %v743_v44, %v554_v46 }
 0x1bf   : > { %v556_v49 = vadd.f32 %v743_v44, %v555_v47 }
 0x1c1   : > { %v560_v52 = vsel %vm559_vm11, %v743_v44, %v556_v49 }
 0x1c2   : > { %v565_v53 = vsel %vm562_vm12, %v564_v51, %v560_v52 }
 0x1c3   : > { %579 = vperm.xlu2 %730, %v574_v37   ;;  %v585_v55 = vperm.slane %v565_v53, 0  ;;  %v584_v58 = vrot.slane %v565_v53, 1 }
 0x1c5   : > { %v586_v60 = vperm.slane %v584_v58, 0 }
 0x215   : > { %v573_v54 = vpop.permute.xlu2 %572 }
 0x216   : > { %v581_v56 = vmul.f32 %v573_v54, %v915_v3 }
 0x218   : > { %v589_v57 = vmul.f32 %v585_v55, %v581_v56 }
 0x21a   : > { %591 = vst [vmem:[%s326_s14] sm:$0xff] %v589_v57 }
 0x21d   : > { %v580_v59 = vpop.permute.xlu2 %579 }
 0x21e   : > { %v582_v61 = vmul.f32 %v580_v59, %v919_v5 }
 0x220   : > { %v590_v62 = vmul.f32 %v586_v60, %v582_v61 }
 0x222   : > { %592 = vst [vmem:[%s326_s14 + $0x8] sm:$0xff] %v590_v62 }
 0x223   : > { %771 = shalt.err (!%p768_p3)
}
 0x224   : > { %s808_s24 = smov 128   ;;  %s809_s29 = smov 8  }
 0x225   : > { %689 = dma.vmem_to_hbm [thread:$0]  (%p898_p5), %s607_s16, 256, %s609_s17, %s594_s13, %s808_s24, %s808_s24, %s809_s29  }
 0x226 PF: > { %p695_p4 = scmp.ge.s32.totalorder %s806_s12, 2  ;;  %s623_s14 = sand.u32 1, %s794_s30  }
 0x227   : > { %s624_s23 = scalar_lea.sflag [#allocation3], %s623_s14 }
 0x228   : > { %p692_p7 = pnand %p695_p4, %p902_p6 }
 0x22a   : > { %p693_p8 = pneg %p692_p7 }
 0x22c   : > { %789 = dma.done.wait (%p693_p8), %s624_s23, 256  }
 0x22d   : > { %791 = vsyncadd (%p693_p8), %s624_s23, 4294967040  ;;  %p19_p9 = scmp.ge.s32.totalorder %s885_s15, 5   ;;  %s1064_s30 = smov %s798_s10 }
 0x22e   : > { %s1065_s10 = smov %s802_s11  ;;  %s1066_s11 = smov %s896_s18 }
 0x22f   : > { %s1067_s12 = smov %s885_s15  ;;  %21 = sbr.rel (!%p19_p9) target bundleno = 3 (0x3), region = 91 }
 0x234   :  { %630 = vsyncpa [#allocation3], 1 }
 0x235   :  { %632 = vsyncpa [#allocation3 + $0x1], 1 }

// kernel: tpu_custom_call.1
= control target key start
LH: loop header
LB: loop body
LE: loop exit
PB: predicated region body
PF: predicated region fallthrough
CT: control target
= control target key end

     0   :  { %14 = vsyncpa [#allocation3], 0  ;;  %s1052_s0 = inlined_call_operand.vmem [shape: f32[6,8,128], index: 0, kind: input, shape index: {}]   ;;  %s1053_s1 = inlined_call_operand.vmem [shape: f32[8,32], index: 1, kind: input, shape index: {}]   ;;  %s1054_s2 = inlined_call_operand.vmem [shape: f32[1,32], index: 2, kind: input, shape index: {}]   ;;  %s1055_s3 = inlined_call_operand.vmem [shape: f32[32,8], index: 3, kind: input, shape index: {}]   ;;  %s1056_s4 = inlined_call_operand.vmem [shape: f32[1,8], index: 4, kind: input, shape index: {}]   ;;  %s1057_s5 = inlined_call_operand.vmem [shape: f32[128,32], index: 5, kind: input, shape index: {}]   ;;  %s1058_s6 = inlined_call_operand.vmem [shape: f32[1,32], index: 6, kind: input, shape index: {}]   ;;  %s1059_s7 = inlined_call_operand.vmem [shape: f32[32,128], index: 7, kind: input, shape index: {}]   ;;  %s1060_s8 = inlined_call_operand.vmem [shape: f32[1,128], index: 8, kind: input, shape index: {}]   ;;  %s1061_s9 = inlined_call_operand.hbm [shape: f32[6,8,128], index: 9, kind: output, shape index: {}]  }
   0x1   :  { %16 = vsyncpa [#allocation3 + $0x1], 0  ;;  %s860_s30 = smov 0   ;;  %s862_s10 = smov 0  }
   0x2   :  { %s864_s11 = smov 0   ;;  %s866_s12 = smov 0  }
   0x3 LB: > { %s881_s13 = sadd.s32 4294967295, %s806_s12   ;;  %s671_s14 = sadd.s32 4294967294, %s806_s12   ;;  %s806_s12 = sphi %s866_s12, %s1067_s12   ;;  %s802_s11 = sphi %s864_s11, %s1066_s11   ;;  %s798_s10 = sphi %s862_s10, %s1065_s10   ;;  %s794_s30 = sphi %s860_s30, %s1064_s30  }
   0x4   : > { %s885_s15 = sadd.s32 1, %s806_s12   ;;  %s223_s16 = sadd.s32 1, %s802_s11 }
   0x5   : > { %s220_s17 = ssub.s32 %s806_s12, %s885_s15  ;;  %p233_p0 = scmp.ne.s32.totalorder %s802_s11, %s798_s10 }
   0x6   : > { %p221_p1 = scmp.eq.s32.totalorder %s220_s17, 0  ;;  %p234_p2 = scmp.eq.s32.totalorder %s881_s13, 2 }
   0x7   : > { %p239_p3 = scmp.ne.s32.totalorder %s798_s10, %s794_s30  ;;  %p240_p4 = scmp.eq.s32.totalorder %s671_s14, 2 }
   0x8   : > { %s896_s18 = scalar_select %p221_p1, %s802_s11, %s223_s16  }
   0x9   : > { %p898_p5 = por %p234_p2, %p233_p0  ;;  %p902_p6 = por %p240_p4, %p239_p3 }
   0xa   : > { %p674_p7 = scmp.ge.s32.totalorder %s806_s12, 1  ;;  %p291_p8 = scmp.lt.s32.totalorder %s806_s12, 4 }
   0xc   : > { %p292_p9 = pnand %p674_p7, %p291_p8 }
   0xd   : > { %s676_s21 = sshll.u32 (!%p292_p9), %s881_s13, 1  ;;  %s324_s24 = sand.u32 (!%p292_p9), 1, %s798_s10  }
   0xe   : > { %295 = sbr.rel (%p292_p9) target bundleno = 550 (0x226), region = 56  ;;  %p328_p10 = scmp.lt.s32.totalorder (!%p292_p9), %s676_s21, 5 }
   0xf   : > { %s688_s26 = sshll.u32 (!%p292_p9), %s881_s13, 4  ;;  %s594_s13 = scalar_lea.sflag (!%p292_p9), [#allocation3], %s324_s24 }
  0x10   : > { %s605_s29 = scalar_lea.hbm (!%p292_p9), %s1061_s9, %s688_s26  ;;  %s764_s26 = scalar_lea.hbm (!%p292_p9), %s1061_s9, 48 }
  0x11   : > { %s608_s17 = sshll.u32 (!%p292_p9), %s605_s29, 4  ;;  %s609_s17 = int_to_ptr.hbm [resolvable:$true] %s608_s17 }
  0x13   : > { %v336_v0 = vlaneseq  ;;  %s1069_s21 = smov (!%p328_p10, %s676_s21), 5  ;;  %v386_v7 = vld [vmem:[%s1053_s1] sm:$0xff]  ;;  %v468_v8 = vld [vmem:[%s1057_s5 + $0x78] sm:$0xff]  ;;  %v467_v9 = vld [vmem:[%s1057_s5 + $0x70] sm:$0xff]  ;;  %vm395_vm2 = vcmask 1041409   ;;  %vm397_vm3 = vcmask 64512  }
  0x14   : > { %s677_s22 = sshll.u32 %s1069_s21, 3  ;;  %415 = vmatpush.msra.mxu0 %v386_v7  ;;  %477 = vmatpush.msra.mxu2 %v468_v8  ;;  %v466_v14 = vld [vmem:[%s1057_s5 + $0x68] sm:$0xff]  ;;  %v465_v19 = vld [vmem:[%s1057_s5 + $0x60] sm:$0xff]  ;;  %v424_v24 = vld [vmem:[%s1055_s3 + $0x18] sm:$0xff]  ;;  %vm429_vm4 = vcmask 261120   ;;  %s758_s21 = sshra.s32 %s609_s17, 4  ;;  %s759_s21 = int_to_ptr.hbm [resolvable:$true] %s758_s21 }
  0x15   : > { %v909_v1 = vand.u32 127, %v336_v0  ;;  %v342_v2 = vshrl.u32 %v336_v0, 7  ;;  %s331_s25 = scalar_lea.vmem %s1052_s0, %s677_s22  ;;  %v464_v25 = vld [vmem:[%s1057_s5 + $0x58] sm:$0xff]  ;;  %445 = vmatpush.msra.mxu1 %v424_v24  ;;  %v463_v26 = vld [vmem:[%s1057_s5 + $0x50] sm:$0xff]  ;;  %v462_v31 = vld [vmem:[%s1057_s5 + $0x48] sm:$0xff]  ;;  %s760_s22 = scalar_lea.hbm %s759_s21, 16 }
  0x16   : > { %v915_v3 = vld [vmem:[%s331_s25] sm:$0xff]  ;;  %v919_v5 = vld [vmem:[%s331_s25 + $0x8] sm:$0xff]  ;;  %478 = vmatpush.msra.mxu2 %v467_v9  ;;  %v460_v37 = vld [vmem:[%s1057_s5 + $0x38] sm:$0xff]  ;;  %s675_s25 = sshll.u32 %s324_s24, 4  ;;  %p761_p11 = scmp.ne.s32.totalorder %s759_s21, %s760_s22 }
  0x17   : > { %730 = vset.pattern.permute.xlu2 %v342_v2  ;;  %731 = vset.pattern.permute.xlu0 %v342_v2  ;;  %vm338_vm0 = vcmp.lt.s32.totalorder %v909_v1, 100  ;;  %vm343_vm1 = vcmp.lt.s32.totalorder %v342_v2, 4  ;;  %v370_v10 = vrot.slane %v915_v3, 4  ;;  %v376_v11 = vrot.slane %v919_v5, 4  ;;  %v461_v32 = vld [vmem:[%s1057_s5 + $0x40] sm:$0xff]  ;;  %v459_v39 = vld [vmem:[%s1057_s5 + $0x30] sm:$0xff]  ;;  %p765_p0 = scmp.lt.s32.totalorder %s759_s21, %s1061_s9  ;;  %p766_p1 = scmp.lt.s32.totalorder %s764_s26, %s760_s22 }
  0x18   : > { %350 = vadd.xlane.f32.xlu0 %v915_v3  ;;  %v339_v4 = vsel %vm338_vm0, %v915_v3, -inf  ;;  %v340_v6 = vsel %vm338_vm0, %v919_v5, -inf  ;;  %v344_v12 = vsel %vm343_vm1, %v915_v3, -inf  ;;  %v345_v13 = vsel %vm343_vm1, %v919_v5, -inf  ;;  %479 = vmatpush.msra.mxu2 %v466_v14  ;;  %v458_v45 = vld [vmem:[%s1057_s5 + $0x28] sm:$0xff]  ;;  %v457_v46 = vld [vmem:[%s1057_s5 + $0x20] sm:$0xff]  ;;  %p762_p12 = pnand %p761_p11, %p898_p5 }
  0x19   : > { %346 = vmax.xlane.f32.xlu1 %v339_v4  ;;  %v358_v15 = vrot.slane %v344_v12, 4  ;;  %v364_v16 = vrot.slane %v345_v13, 4  ;;  %v371_v17 = vadd.f32 %v370_v10, %v915_v3  ;;  %v377_v18 = vadd.f32 %v376_v11, %v919_v5  ;;  %v456_v52 = vld [vmem:[%s1057_s5 + $0x18] sm:$0xff]  ;;  %v455_v54 = vld [vmem:[%s1057_s5 + $0x10] sm:$0xff]  ;;  %v454_v60 = vld [vmem:[%s1057_s5 + $0x8] sm:$0xff]  ;;  %s326_s14 = scalar_lea.vmem [#allocation2], %s675_s25  ;;  %p767_p2 = por %p766_p1, %p765_p0 }
  0x1a   : > { %480 = vmatpush.msra.mxu2 %v465_v19  ;;  %v453_v62 = vld [vmem:[%s1057_s5] sm:$0xff]  ;;  %v422_v7 = vld [vmem:[%s1055_s3 + $0x8] sm:$0xff]  ;;  %v501_v8 = vld [vmem:[%s1059_s7 + $0x18] sm:$0xff]  ;;  %s606_s16 = sshll.u32 %s326_s14, 4  ;;  %p763_p13 = pneg %p762_p12  ;;  %s607_s16 = int_to_ptr.vmem [resolvable:$true] %s606_s16 }
  0x1b   : > { %v359_v20 = vmax.f32 %v344_v12, %v358_v15  ;;  %v365_v21 = vmax.f32 %v345_v13, %v364_v16  ;;  %v372_v22 = vrot.slane %v371_v17, 2  ;;  %v378_v23 = vrot.slane %v377_v18, 2  ;;  %521 = vmatpush.msra.mxu3 %v501_v8  ;;  %v500_v9 = vld [vmem:[%s1059_s7 + $0x10] sm:$0xff]  ;;  %v499_v10 = vld [vmem:[%s1059_s7 + $0x8] sm:$0xff]  ;;  %v498_v11 = vld [vmem:[%s1059_s7] sm:$0xff] }
  0x1c   : > { %481 = vmatpush.msra.mxu2 %v464_v25  ;;  %v732_v12 = vld [vmem:[%s1054_s2] ss:$0 sm:$0xff]  ;;  %p768_p3 = pnand %p767_p2, %p763_p13 }
  0x1d   : > { %v360_v27 = vrot.slane %v359_v20, 2  ;;  %v366_v28 = vrot.slane %v365_v21, 2  ;;  %v373_v29 = vadd.f32 %v372_v22, %v371_v17  ;;  %v379_v30 = vadd.f32 %v378_v23, %v377_v18  ;;  %522 = vmatpush.msra.mxu3 %v500_v9  ;;  %v733_v16 = vld [vmem:[%s1058_s6] ss:$0 sm:$0xff] }
  0x1e   : > { %482 = vmatpush.msra.mxu2 %v463_v26 }
  0x1f   : > { %v361_v33 = vmax.f32 %v359_v20, %v360_v27  ;;  %v367_v34 = vmax.f32 %v365_v21, %v366_v28  ;;  %v374_v35 = vrot.slane %v373_v29, 1  ;;  %v380_v36 = vrot.slane %v379_v30, 1  ;;  %523 = vmatpush.msra.mxu3 %v499_v10  ;;  %v734_v20 = vld [vmem:[%s1056_s4] ss:$0 sm:$0xff] }
  0x20   : > { %352 = vadd.xlane.f32.xlu0 %v919_v5  ;;  %483 = vmatpush.msra.mxu2 %v462_v31 }
  0x21   : > { %348 = vmax.xlane.f32.xlu1 %v340_v6  ;;  %v362_v40 = vrot.slane %v361_v33, 1  ;;  %v368_v42 = vrot.slane %v367_v34, 1  ;;  %v375_v43 = vadd.f32 %v374_v35, %v373_v29  ;;  %v381_v44 = vadd.f32 %v380_v36, %v379_v30  ;;  %v423_v6 = vld [vmem:[%s1055_s3 + $0x10] sm:$0xff]  ;;  %524 = vmatpush.msra.mxu3 %v498_v11 }
  0x22   : > { %484 = vmatpush.msra.mxu2 %v461_v32  ;;  %446 = vmatpush.msra.mxu1 %v423_v6 }
  0x23   : > { %v363_v47 = vmax.f32 %v361_v33, %v362_v40  ;;  %v369_v49 = vmax.f32 %v367_v34, %v368_v42  ;;  %v382_v50 = vmul.f32 0.25, %v375_v43  ;;  %v383_v51 = vmul.f32 0.25, %v381_v44 }
  0x24   : > { %485 = vmatpush.msra.mxu2 %v460_v37  ;;  %447 = vmatpush.msra.mxu1 %v422_v7 }
  0x25   : > { %v384_v58 = vadd.f32 %v382_v50, %v363_v47  ;;  %v385_v59 = vadd.f32 %v383_v51, %v369_v49 }
  0x26   : > { %486 = vmatpush.msra.mxu2 %v459_v39 }
  0x27   : > { %v475_v2 = vsel %vm395_vm2, %v385_v59, %v384_v58 }
  0x28   : > { %487 = vmatpush.msra.mxu2 %v458_v45 }
  0x2a   : > { %488 = vmatpush.msra.mxu2 %v457_v46 }
  0x2c   : > { %489 = vmatpush.msra.mxu2 %v456_v52 }
  0x2e   : > { %490 = vmatpush.msra.mxu2 %v455_v54 }
  0x30   : > { %491 = vmatpush.msra.mxu2 %v454_v60 }
  0x32   : > { %492 = vmatpush.msra.mxu2 %v453_v62 }
  0x33   : > { %493 = vmatmul.f32.vlgmr.msra.gmra.mxu2 %v475_v2 }
  0x8b   : > { %v351_v38 = vpop.xlane.xlu0 %350 }
  0x8c   : > { %v347_v41 = vpop.xlane.xlu1 %346  ;;  %v354_v48 = vmul.f32 0.01, %v351_v38  ;;  %v735_v38 = vld [vmem:[%s1060_s8] ss:$0 sm:$0xff] }
  0x8e   : > { %v356_v55 = vadd.f32 %v354_v48, %v347_v41 }
  0x90   : > { %v393_v63 = vperm.slane %v356_v55, %v909_v1 }
  0x93   : > { %v353_v53 = vpop.xlane.xlu0 %352 }
  0x94   : > { %v355_v56 = vmul.f32 0.01, %v353_v53  ;;  %v349_v57 = vpop.xlane.xlu1 %348 }
  0x96   : > { %v357_v61 = vadd.f32 %v355_v56, %v349_v57 }
  0x98   : > { %v394_v0 = vperm.slane %v357_v61, %v909_v1  ;;  %v421_v1 = vld [vmem:[%s1055_s3] sm:$0xff] }
  0x99   : > { %448 = vmatpush.msra.mxu1 %v421_v1 }
  0x9a   : > { %v396_v4 = vsel %vm395_vm2, %v394_v0, %v393_v63 }
  0x9b   : > { %678 = vmatmul.msk.f32.vlgmr.msra.gmra.mxu0 %vm397_vm3, %v396_v4 }
  0xb6   : > { %v494_v17 = vpop.f32.mrf.mxu2 }
  0xb7   : > { %v495_v18 = vadd.f32 %v733_v16, %v494_v17 }
  0xb9   : > { %v497_v19 = vmax.f32 %v495_v18, 0.0 }
  0xbb   : > { %680 = vmatmul.msk.f32.vlgmr.msra.gmra.mxu3 %vm429_vm4, %v497_v19 }
 0x118   : > { %v417_v13 = vpop.f32.mrf.mxu0 }
 0x119   : > { %v418_v14 = vadd.f32 %v732_v12, %v417_v13 }
 0x11b   : > { %v420_v15 = vmax.f32 %v418_v14, 0.0 }
 0x11d   : > { %679 = vmatmul.msk.f32.vlgmr.msra.gmra.mxu1 %vm429_vm4, %v420_v15 }
 0x13e   : > { %v526_v39 = vpop.f32.mrf.mxu3 }
 0x13f   : > { %v527_v40 = vadd.f32 %v735_v38, %v526_v39 }
 0x141   : > { %v682_v41 = vmul.f32 -1.442695, %v527_v40 }
 0x19a   : > { %v450_v21 = vpop.f32.mrf.mxu1 }
 0x19b   : > { %v451_v22 = vadd.f32 %v734_v20, %v450_v21 }
 0x19d   : > { %v681_v23 = vmul.f32 -1.442695, %v451_v22 }
 0x19f   : > { %736 = vpow2.f32 %v681_v23 }
 0x1a5   : > { %v737_v24 = vpop.eup %736 }
 0x1a6   : > { %v532_v25 = vadd.f32 1.0, %v737_v24 }
 0x1a8   : > { %738 = vrcp.f32 %v532_v25  ;;  %v544_v29 = vand.u32 2147483648, %v532_v25  ;;  %v542_v31 = vand.u32 2147483647, %v532_v25  ;;  %vm538_vm6 = vweird.f32 %v532_v25 }
 0x1a9   : > { %740 = vpow2.f32 %v682_v41 }
 0x1aa   : > { %v545_v33 = vor.u32 1.1754944e-38, %v544_v29  ;;  %vm543_vm8 = vcmp.eq.f32.partialorder %v542_v31, 8.507059e+37 }
 0x1ae   : > { %v739_v26 = vpop.eup %738 }
 0x1af   : > { %v534_v27 = vmul.f32 %v739_v26, %v532_v25  ;;  %vm539_vm5 = vweird.f32 %v739_v26  ;;  %v741_v42 = vpop.eup %740 }
 0x1b0   : > { %vm540_vm7 = vmor %vm538_vm6, %vm539_vm5  ;;  %v551_v43 = vadd.f32 1.0, %v741_v42 }
 0x1b1   : > { %v535_v28 = vsub.f32 1.0, %v534_v27 }
 0x1b2   : > { %742 = vrcp.f32 %v551_v43  ;;  %vm557_vm9 = vweird.f32 %v551_v43  ;;  %v563_v48 = vand.u32 2147483648, %v551_v43  ;;  %v561_v50 = vand.u32 2147483647, %v551_v43 }
 0x1b3   : > { %v536_v30 = vmul.f32 %v739_v26, %v535_v28 }
 0x1b4   : > { %v564_v51 = vor.u32 1.1754944e-38, %v563_v48  ;;  %vm562_vm12 = vcmp.eq.f32.partialorder %v561_v50, 8.507059e+37 }
 0x1b5   : > { %v537_v32 = vadd.f32 %v739_v26, %v536_v30 }
 0x1b7   : > { %v541_v34 = vsel %vm540_vm7, %v739_v26, %v537_v32 }
 0x1b8   : > { %v546_v35 = vsel %vm543_vm8, %v545_v33, %v541_v34  ;;  %v743_v44 = vpop.eup %742 }
 0x1b9   : > { %v567_v36 = vperm.slane %v546_v35, 0  ;;  %v574_v37 = vperm.slane %v546_v35, 1  ;;  %v553_v45 = vmul.f32 %v743_v44, %v551_v43  ;;  %vm558_vm10 = vweird.f32 %v743_v44 }
 0x1ba   : > { %vm559_vm11 = vmor %vm557_vm9, %vm558_vm10 }
 0x1bb   : > { %572 = vperm.xlu2 %730, %v567_v36   ;;  %v554_v46 = vsub.f32 1.0, %v553_v45 }
 0x1bd   : > { %v555_v47 = vmul.f32 %v743_v44, %v554_v46 }
 0x1bf   : > { %v556_v49 = vadd.f32 %v743_v44, %v555_v47 }
 0x1c1   : > { %v560_v52 = vsel %vm559_vm11, %v743_v44, %v556_v49 }
 0x1c2   : > { %v565_v53 = vsel %vm562_vm12, %v564_v51, %v560_v52 }
 0x1c3   : > { %579 = vperm.xlu2 %730, %v574_v37   ;;  %v585_v55 = vperm.slane %v565_v53, 0  ;;  %v584_v58 = vrot.slane %v565_v53, 1 }
 0x1c5   : > { %v586_v60 = vperm.slane %v584_v58, 0 }
 0x215   : > { %v573_v54 = vpop.permute.xlu2 %572 }
 0x216   : > { %v581_v56 = vmul.f32 %v573_v54, %v915_v3 }
 0x218   : > { %v589_v57 = vmul.f32 %v585_v55, %v581_v56 }
 0x21a   : > { %591 = vst [vmem:[%s326_s14] sm:$0xff] %v589_v57 }
 0x21d   : > { %v580_v59 = vpop.permute.xlu2 %579 }
 0x21e   : > { %v582_v61 = vmul.f32 %v580_v59, %v919_v5 }
 0x220   : > { %v590_v62 = vmul.f32 %v586_v60, %v582_v61 }
 0x222   : > { %592 = vst [vmem:[%s326_s14 + $0x8] sm:$0xff] %v590_v62 }
 0x223   : > { %771 = shalt.err (!%p768_p3)
}
 0x224   : > { %s808_s24 = smov 128   ;;  %s809_s29 = smov 8  }
 0x225   : > { %689 = dma.vmem_to_hbm [thread:$0]  (%p898_p5), %s607_s16, 256, %s609_s17, %s594_s13, %s808_s24, %s808_s24, %s809_s29  }
 0x226 PF: > { %p695_p4 = scmp.ge.s32.totalorder %s806_s12, 2  ;;  %s623_s14 = sand.u32 1, %s794_s30  }
 0x227   : > { %s624_s23 = scalar_lea.sflag [#allocation3], %s623_s14 }
 0x228   : > { %p692_p7 = pnand %p695_p4, %p902_p6 }
 0x22a   : > { %p693_p8 = pneg %p692_p7 }
 0x22c   : > { %789 = dma.done.wait (%p693_p8), %s624_s23, 256  }
 0x22d   : > { %791 = vsyncadd (%p693_p8), %s624_s23, 4294967040  ;;  %p19_p9 = scmp.ge.s32.totalorder %s885_s15, 5   ;;  %s1064_s30 = smov %s798_s10 }
 0x22e   : > { %s1065_s10 = smov %s802_s11  ;;  %s1066_s11 = smov %s896_s18 }
 0x22f   : > { %s1067_s12 = smov %s885_s15  ;;  %21 = sbr.rel (!%p19_p9) target bundleno = 3 (0x3), region = 91 }
 0x234   :  { %630 = vsyncpa [#allocation3], 1 }
 0x235   :  { %632 = vsyncpa [#allocation3 + $0x1], 1 }

</bundles_post_ra>
